<compile_context>
chip_gen: v5e
topology: v5e:2x2
jax: 0.10.0
libtpu: 0.0.40
codegen_flags: <defaults>
</compile_context>

<pallas_src>
import functools

import jax
import jax.numpy as jnp
from jax.experimental import pallas as pl
from jax.experimental.pallas import tpu as pltpu


def _round_up(v, m):
    return -(-v // m) * m


# --------------------------------------------------------------------------- #
# Phase 1: per-image convolution (im2col-free) + centered partial BN stats.
# --------------------------------------------------------------------------- #
def _conv_stats_kernel(x_ref, w_ref, conv_ref, stats_ref, xpad_ref, *,
                       cin, cout, w, ksize, stride, pad,
                       h_out, w_out, halo_lo, hw_in, hw_out):
    f32 = jnp.float32
    cdtype = xpad_ref.dtype

    # -- zero-padded, lane-flat copy of this image; zero ONLY the halo strips --
    halo_hi = xpad_ref.shape[1] - halo_lo - hw_in
    if halo_lo > 0:
        xpad_ref[:, :halo_lo] = jnp.zeros((cin, halo_lo), cdtype)
    if halo_hi > 0:
        xpad_ref[:, halo_lo + hw_in:] = jnp.zeros((cin, halo_hi), cdtype)
    xpad_ref[:, halo_lo:halo_lo + hw_in] = x_ref[0]

    # -- per-kw column-validity masks (hoisted out of the tap loops).
    #    Output column p is valid for tap column kw iff the source x-coordinate
    #    (p % w_out)*stride + kw - pad lies inside [0, w). Row validity is
    #    covered by the zero halos of xpad. ------------------------------------
    xo = jax.lax.broadcasted_iota(jnp.int32, (1, hw_out), 1) % w_out
    col_ok = []
    for kw in range(ksize):
        c = xo * stride + (kw - pad)
        col_ok.append(jnp.logical_and(c >= 0, c < w).astype(cdtype))

    acc = jnp.zeros((cout, hw_out), f32)

    if stride == 1 and hw_out == hw_in:
        # 'same' geometry: one shifted lane-slice + one MXU dot per tap; no
        # patch matrix is ever written to VMEM.
        for kh in range(ksize):
            for kw in range(ksize):
                d = (kh - pad) * w + (kw - pad)
                sl = xpad_ref[:, halo_lo + d: halo_lo + d + hw_in]   # (Cin, HW)
                if kw != pad:                                        # center tap needs no mask
                    sl = sl * col_ok[kw]
                acc = acc + jnp.dot(w_ref[kh * ksize + kw], sl,
                                    preferred_element_type=f32)
    else:
        # Down-sampling / even-kernel path: build each tap's RHS directly at
        # output resolution via strided lane slices (no full-res conv, no
        # one-hot selection matmul).
        for kh in range(ksize):
            for kw in range(ksize):
                rows = []
                for yo in range(h_out):
                    start = halo_lo + (yo * stride + kh - pad) * w + (kw - pad)
                    rows.append(xpad_ref[:, pl.ds(start, w_out, stride=stride)])
                rhs = rows[0] if h_out == 1 else jnp.concatenate(rows, axis=-1)
                if kw != pad:
                    rhs = rhs * col_ok[kw]
                acc = acc + jnp.dot(w_ref[kh * ksize + kw], rhs,
                                    preferred_element_type=f32)

    # -- lane-dense store of this image's conv output + centered partial stats.
    conv_ref[0] = acc.astype(conv_ref.dtype)
    m = jnp.sum(acc, axis=-1, keepdims=True) * (1.0 / hw_out)        # (Cout, 1)
    c = acc - m
    m2 = jnp.sum(c * c, axis=-1, keepdims=True)                      # (Cout, 1)
    stats_ref[0] = jnp.concatenate([m, m2], axis=-1)                 # (Cout, 2)


# --------------------------------------------------------------------------- #
# Phase 2: Chan/Welford combine of per-image stats + BN normalization.
# --------------------------------------------------------------------------- #
def _bn_kernel(conv_ref, stats_ref, gb_ref, o_ref, *, n, hw_out, eps):
    f32 = jnp.float32
    s = stats_ref[...].astype(f32)                    # (N, Cout, 2), tiny
    m = s[:, :, 0:1]                                  # per-image means
    m2 = s[:, :, 1:2]                                 # per-image centered SS
    mean = jnp.sum(m, axis=0) * (1.0 / n)             # (Cout, 1)
    d = m - mean
    ssd = jnp.sum(d * d, axis=0)                      # (Cout, 1)
    var = (jnp.sum(m2, axis=0) + hw_out * ssd) * (1.0 / (n * hw_out))  # biased
    gamma = gb_ref[:, 0:1]
    beta = gb_ref[:, 1:2]
    scale = gamma * jax.lax.rsqrt(var + eps)          # (Cout, 1)
    shift = beta - mean * scale                       # (Cout, 1)
    # Single fused, lane-dense store per grid step (broadcasts emitted once).
    o_ref[0] = (conv_ref[0] * scale + shift).astype(o_ref.dtype)


# --------------------------------------------------------------------------- #
# Wrapper
# --------------------------------------------------------------------------- #
def cb_forward(x_nchw, weight_hwio, gamma, beta, *, ksize, stride=1, eps=1e-3,
               compute_dtype=jnp.bfloat16):
    """Fused Conv2d(bias=False) + BatchNorm2d(training-mode) forward.

    x_nchw: (N, Cin, H, W); weight_hwio: (K, K, Cin, Cout); returns NCHW f32.
    """
    n, cin, h, w = x_nchw.shape
    cout = weight_hwio.shape[-1]
    pad = (ksize - 1) // 2
    h_out = (h + 2 * pad - ksize) // stride + 1
    w_out = (w + 2 * pad - ksize) // stride + 1
    hw_in, hw_out = h * w, h_out * w_out

    # Halo sizes for the lane-flat padded copy. Start halo is 128-aligned so the
    # interior copy is an unmasked lane-aligned store; end halo covers the
    # farthest tap read (exactly computed, incl. the strided path).
    max_off = (((h_out - 1) * stride + (ksize - 1) - pad) * w
               + (w_out - 1) * stride + (ksize - 1) - pad)
    halo_lo = _round_up(pad * w + pad, 128) if pad > 0 else 0
    over_hi = max(max_off - (hw_in - 1), 0) + (w if stride > 1 else 0)
    halo_hi = _round_up(over_hi, 128) if over_hi > 0 else 0

    # Transpose-free glue: NCHW -> (N, Cin, H*W) is a free reshape; weights are
    # regrouped per tap as (K*K, Cout, Cin). MXU operands in bf16, f32 accum.
    x_flat = x_nchw.reshape(n, cin, hw_in).astype(compute_dtype)
    w_taps = (weight_hwio.reshape(ksize * ksize, cin, cout)
              .transpose(0, 2, 1).astype(compute_dtype))             # (KK, Cout, Cin)
    gb = jnp.stack([gamma, beta], axis=1).astype(jnp.float32)        # (Cout, 2)

    bpe = jnp.dtype(compute_dtype).itemsize
    xpad_bytes = cin * (halo_lo + hw_in + halo_hi) * bpe
    blk1 = (cin * hw_in * bpe + ksize * ksize * cout * cin * bpe
            + cout * hw_out * 4 + cout * 2 * 4)
    vmem1 = int(min(48 << 20, max(16 << 20, 2 * blk1 + xpad_bytes + (2 << 20))))
    blk2 = 2 * cout * hw_out * 4 + n * cout * 2 * 4 + cout * 2 * 4
    vmem2 = int(min(48 << 20, max(16 << 20, 2 * blk2 + (2 << 20))))

    conv_kernel = functools.partial(
        _conv_stats_kernel, cin=cin, cout=cout, w=w, ksize=ksize,
        stride=stride, pad=pad, h_out=h_out, w_out=w_out,
        halo_lo=halo_lo, hw_in=hw_in, hw_out=hw_out)

    conv, stats = pl.pallas_call(
        conv_kernel,
        out_shape=(jax.ShapeDtypeStruct((n, cout, hw_out), jnp.float32),
                   jax.ShapeDtypeStruct((n, cout, 2), jnp.float32)),
        grid=(n,),
        in_specs=[
            pl.BlockSpec((1, cin, hw_in), lambda b: (b, 0, 0)),
            pl.BlockSpec((ksize * ksize, cout, cin), lambda b: (0, 0, 0)),
        ],
        out_specs=(
            pl.BlockSpec((1, cout, hw_out), lambda b: (b, 0, 0)),
            pl.BlockSpec((1, cout, 2), lambda b: (b, 0, 0)),
        ),
        scratch_shapes=[
            pltpu.VMEM((cin, halo_lo + hw_in + halo_hi), compute_dtype),
        ],
        compiler_params=pltpu.CompilerParams(
            dimension_semantics=("parallel",),
            vmem_limit_bytes=vmem1),
    )(x_flat, w_taps)

    bn_kernel = functools.partial(_bn_kernel, n=n, hw_out=hw_out, eps=eps)
    out = pl.pallas_call(
        bn_kernel,
        out_shape=jax.ShapeDtypeStruct((n, cout, hw_out), jnp.float32),
        grid=(n,),
        in_specs=[
            pl.BlockSpec((1, cout, hw_out), lambda b: (b, 0, 0)),
            pl.BlockSpec((n, cout, 2), lambda b: (0, 0, 0)),
            pl.BlockSpec((cout, 2), lambda b: (0, 0)),
        ],
        out_specs=pl.BlockSpec((1, cout, hw_out), lambda b: (b, 0, 0)),
        compiler_params=pltpu.CompilerParams(
            dimension_semantics=("parallel",),
            vmem_limit_bytes=vmem2),
    )(conv, stats, gb)

    return out.reshape(n, cout, h_out, w_out)   # free reshape back to NCHW


def _reference(x_nchw, weight_hwio, gamma, beta, *, ksize, stride, eps):
    """Plain-JAX reference mirroring the PyTorch training-mode CB forward."""
    pad = (ksize - 1) // 2
    w_oihw = jnp.transpose(weight_hwio, (3, 2, 0, 1))
    conv = jax.lax.conv_general_dilated(
        x_nchw, w_oihw, window_strides=(stride, stride),
        padding=((pad, pad), (pad, pad)),
        dimension_numbers=("NCHW", "OIHW", "NCHW"),
        precision=jax.lax.Precision.HIGHEST)
    mean = conv.mean(axis=(0, 2, 3))
    var = conv.var(axis=(0, 2, 3))   # biased variance, as BN training forward uses
    y = (conv - mean[None, :, None, None]) * jax.lax.rsqrt(
        var + eps)[None, :, None, None]
    return y * gamma[None, :, None, None] + beta[None, :, None, None]


if __name__ == "__main__":
    key = jax.random.PRNGKey(0)
    k_x, k_w, k_g, k_b = jax.random.split(key, 4)

    # Shapes consistent with the module: CB(nIn=4, nOut=8, kSize=3)
    N, C_IN, H, W = 2, 4, 16, 16
    C_OUT, KSIZE, STRIDE, EPS = 8, 3, 1, 1e-3

    x = jax.random.normal(k_x, (N, C_IN, H, W), jnp.float32)
    weight = jax.random.normal(k_w, (KSIZE, KSIZE, C_IN, C_OUT),
                               jnp.float32) * 0.1          # conv weight (HWIO)
    gamma = 1.0 + 0.1 * jax.random.normal(k_g, (C_OUT,), jnp.float32)  # BN weight
    beta = 0.1 * jax.random.normal(k_b, (C_OUT,), jnp.float32)         # BN bias

    out = cb_forward(x, weight, gamma, beta, ksize=KSIZE, stride=STRIDE, eps=EPS)
    jax.block_until_ready(out)

    # Reference uses the SAME bf16-rounded conv operands as the kernel's MXU
    # inputs (both sides accumulate in f32), so a tight tolerance is fair.
    xq = x.astype(jnp.bfloat16).astype(jnp.float32)
    wq = weight.astype(jnp.bfloat16).astype(jnp.float32)
    ref = _reference(xq, wq, gamma, beta, ksize=KSIZE, stride=STRIDE, eps=EPS)

    assert out.shape == (N, C_OUT, H, W)
    err = float(jnp.max(jnp.abs(out - ref)))
    assert jnp.allclose(out, ref, atol=2e-3, rtol=2e-3), err

    print("KERNEL_OK")
</pallas_src>

<mosaic_0001>
module attributes {stable_mosaic.version = 11 : i64} {
  func.func @_conv_stats_kernel(%arg0: i32, %arg1: memref<1x4x256xbf16, #tpu.memory_space<vmem>>, %arg2: memref<9x8x4xbf16, #tpu.memory_space<vmem>>, %arg3: memref<1x8x256xf32, #tpu.memory_space<vmem>>, %arg4: memref<1x8x2xf32, #tpu.memory_space<vmem>>, %arg5: memref<4x512xbf16, #tpu.memory_space<vmem>>) attributes {dimension_semantics = [#tpu.dimension_semantics<parallel>], iteration_bounds = array<i64: 2>, scalar_prefetch = 0 : i64, scratch_operands = 1 : i64, tpu.core_type = #tpu.core_type<tc>, window_params = [{transform_indices = @transform_0, window_bounds = array<i64: 1, 4, 256>}, {pipeline_mode = #tpu.pipeline_mode<synchronous>, transform_indices = @transform_1, window_bounds = array<i64: 9, 8, 4>}, {transform_indices = @transform_2, window_bounds = array<i64: 1, 8, 256>}, {transform_indices = @transform_3, window_bounds = array<i64: 1, 8, 2>}]} {
    %cst = arith.constant 0.000000e+00 : bf16
    %0 = vector.broadcast %cst : bf16 to vector<4x128xbf16>
    %c0 = arith.constant 0 : index
    %c0_0 = arith.constant 0 : index
    %1 = vector.load %arg5[%c0, %c0_0] : memref<4x512xbf16, #tpu.memory_space<vmem>>, vector<4x128xbf16>
    tpu.vector_store %arg5[%c0, %c0_0], %0 {strides = array<i32>} : memref<4x512xbf16, #tpu.memory_space<vmem>>, vector<4x128xbf16>,
    %cst_1 = arith.constant 0.000000e+00 : bf16
    %2 = vector.broadcast %cst_1 : bf16 to vector<4x128xbf16>
    %c0_2 = arith.constant 0 : index
    %c384 = arith.constant 384 : index
    %3 = vector.load %arg5[%c0_2, %c384] : memref<4x512xbf16, #tpu.memory_space<vmem>>, vector<4x128xbf16>
    tpu.vector_store %arg5[%c0_2, %c384], %2 {strides = array<i32>} : memref<4x512xbf16, #tpu.memory_space<vmem>>, vector<4x128xbf16>,
    %c0_3 = arith.constant 0 : index
    %c0_4 = arith.constant 0 : index
    %c0_5 = arith.constant 0 : index
    %4 = vector.load %arg1[%c0_3, %c0_4, %c0_5] : memref<1x4x256xbf16, #tpu.memory_space<vmem>>, vector<1x4x256xbf16>
    %5 = vector.shape_cast %4 : vector<1x4x256xbf16> to vector<4x256xbf16>
    %c0_6 = arith.constant 0 : index
    %c128 = arith.constant 128 : index
    %6 = vector.load %arg5[%c0_6, %c128] : memref<4x512xbf16, #tpu.memory_space<vmem>>, vector<4x256xbf16>
    tpu.vector_store %arg5[%c0_6, %c128], %5 {strides = array<i32>} : memref<4x512xbf16, #tpu.memory_space<vmem>>, vector<4x256xbf16>,
    %7 = tpu.iota {dimensions = array<i32: 1>} : vector<1x256xi32>
    %c16_i32 = arith.constant 16 : i32
    %c0_i32 = arith.constant 0 : i32
    %8 = arith.cmpi eq, %c16_i32, %c0_i32 : i32
    %c1_i32 = arith.constant 1 : i32
    %9 = arith.select %8, %c1_i32, %c16_i32 : i32
    %10 = vector.broadcast %9 : i32 to vector<1x256xi32>
    %11 = arith.remsi %7, %10 : vector<1x256xi32>
    %c0_i32_7 = arith.constant 0 : i32
    %12 = vector.broadcast %c0_i32_7 : i32 to vector<1x256xi32>
    %13 = arith.cmpi ne, %11, %12 : vector<1x256xi32>
    %c0_i32_8 = arith.constant 0 : i32
    %14 = vector.broadcast %c0_i32_8 : i32 to vector<1x256xi32>
    %15 = arith.cmpi slt, %11, %14 : vector<1x256xi32>
    %c0_i32_9 = arith.constant 0 : i32
    %16 = arith.cmpi slt, %9, %c0_i32_9 : i32
    %17 = vector.broadcast %16 : i1 to vector<1x256xi1>
    %18 = vector.broadcast %17 : vector<1x256xi1> to vector<1x256xi1>
    %19 = arith.xori %15, %18 : vector<1x256xi1>
    %20 = arith.andi %19, %13 : vector<1x256xi1>
    %21 = vector.broadcast %9 : i32 to vector<1x256xi32>
    %22 = arith.addi %11, %21 : vector<1x256xi32>
    %23 = arith.select %20, %22, %11 : vector<1x256xi1>, vector<1x256xi32>
    %c1_i32_10 = arith.constant 1 : i32
    %24 = vector.broadcast %c1_i32_10 : i32 to vector<1x256xi32>
    %25 = arith.muli %23, %24 : vector<1x256xi32>
    %c-1_i32 = arith.constant -1 : i32
    %26 = vector.broadcast %c-1_i32 : i32 to vector<1x256xi32>
    %27 = arith.addi %25, %26 : vector<1x256xi32>
    %c0_i32_11 = arith.constant 0 : i32
    %28 = vector.broadcast %c0_i32_11 : i32 to vector<1x256xi32>
    %29 = arith.cmpi sge, %27, %28 : vector<1x256xi32>
    %c16_i32_12 = arith.constant 16 : i32
    %30 = vector.broadcast %c16_i32_12 : i32 to vector<1x256xi32>
    %31 = arith.cmpi slt, %27, %30 : vector<1x256xi32>
    %32 = arith.andi %29, %31 : vector<1x256xi1>
    %33 = arith.extui %32 : vector<1x256xi1> to vector<1x256xi32>
    %34 = arith.sitofp %33 : vector<1x256xi32> to vector<1x256xf32>
    %35 = arith.truncf %34 : vector<1x256xf32> to vector<1x256xbf16>
    %c1_i32_13 = arith.constant 1 : i32
    %36 = vector.broadcast %c1_i32_13 : i32 to vector<1x256xi32>
    %37 = arith.muli %23, %36 : vector<1x256xi32>
    %c1_i32_14 = arith.constant 1 : i32
    %38 = vector.broadcast %c1_i32_14 : i32 to vector<1x256xi32>
    %39 = arith.addi %37, %38 : vector<1x256xi32>
    %c0_i32_15 = arith.constant 0 : i32
    %40 = vector.broadcast %c0_i32_15 : i32 to vector<1x256xi32>
    %41 = arith.cmpi sge, %39, %40 : vector<1x256xi32>
    %c16_i32_16 = arith.constant 16 : i32
    %42 = vector.broadcast %c16_i32_16 : i32 to vector<1x256xi32>
    %43 = arith.cmpi slt, %39, %42 : vector<1x256xi32>
    %44 = arith.andi %41, %43 : vector<1x256xi1>
    %45 = arith.extui %44 : vector<1x256xi1> to vector<1x256xi32>
    %46 = arith.sitofp %45 : vector<1x256xi32> to vector<1x256xf32>
    %47 = arith.truncf %46 : vector<1x256xf32> to vector<1x256xbf16>
    %cst_17 = arith.constant 0.000000e+00 : f32
    %48 = vector.broadcast %cst_17 : f32 to vector<8x256xf32>
    %c0_18 = arith.constant 0 : index
    %c111 = arith.constant 111 : index
    %49 = vector.load %arg5[%c0_18, %c111] : memref<4x512xbf16, #tpu.memory_space<vmem>>, vector<4x256xbf16>
    %50 = vector.broadcast %35 : vector<1x256xbf16> to vector<4x256xbf16>
    %51 = arith.mulf %49, %50 : vector<4x256xbf16>
    %c0_19 = arith.constant 0 : index
    %c0_20 = arith.constant 0 : index
    %c0_21 = arith.constant 0 : index
    %52 = vector.load %arg2[%c0_19, %c0_20, %c0_21] : memref<9x8x4xbf16, #tpu.memory_space<vmem>>, vector<1x8x4xbf16>
    %53 = vector.shape_cast %52 : vector<1x8x4xbf16> to vector<8x4xbf16>
    %cst_22 = arith.constant dense<0.000000e+00> : vector<8x256xf32>
    %54 = tpu.matmul %53, %51, %cst_22 {dimension_numbers = #tpu.dot_dimension_numbers<[1], [0], [0], [1], [0, 0, 1, 1], [], []>} : vector<8x4xbf16>, vector<4x256xbf16>, vector<8x256xf32> -> vector<8x256xf32>
    %55 = arith.addf %48, %54 : vector<8x256xf32>
    %c0_23 = arith.constant 0 : index
    %c112 = arith.constant 112 : index
    %56 = vector.load %arg5[%c0_23, %c112] : memref<4x512xbf16, #tpu.memory_space<vmem>>, vector<4x256xbf16>
    %c1 = arith.constant 1 : index
    %c0_24 = arith.constant 0 : index
    %c0_25 = arith.constant 0 : index
    %57 = vector.load %arg2[%c1, %c0_24, %c0_25] : memref<9x8x4xbf16, #tpu.memory_space<vmem>>, vector<1x8x4xbf16>
    %58 = vector.shape_cast %57 : vector<1x8x4xbf16> to vector<8x4xbf16>
    %cst_26 = arith.constant dense<0.000000e+00> : vector<8x256xf32>
    %59 = tpu.matmul %58, %56, %cst_26 {dimension_numbers = #tpu.dot_dimension_numbers<[1], [0], [0], [1], [0, 0, 1, 1], [], []>} : vector<8x4xbf16>, vector<4x256xbf16>, vector<8x256xf32> -> vector<8x256xf32>
    %60 = arith.addf %55, %59 : vector<8x256xf32>
    %c0_27 = arith.constant 0 : index
    %c113 = arith.constant 113 : index
    %61 = vector.load %arg5[%c0_27, %c113] : memref<4x512xbf16, #tpu.memory_space<vmem>>, vector<4x256xbf16>
    %62 = vector.broadcast %47 : vector<1x256xbf16> to vector<4x256xbf16>
    %63 = arith.mulf %61, %62 : vector<4x256xbf16>
    %c2 = arith.constant 2 : index
    %c0_28 = arith.constant 0 : index
    %c0_29 = arith.constant 0 : index
    %64 = vector.load %arg2[%c2, %c0_28, %c0_29] : memref<9x8x4xbf16, #tpu.memory_space<vmem>>, vector<1x8x4xbf16>
    %65 = vector.shape_cast %64 : vector<1x8x4xbf16> to vector<8x4xbf16>
    %cst_30 = arith.constant dense<0.000000e+00> : vector<8x256xf32>
    %66 = tpu.matmul %65, %63, %cst_30 {dimension_numbers = #tpu.dot_dimension_numbers<[1], [0], [0], [1], [0, 0, 1, 1], [], []>} : vector<8x4xbf16>, vector<4x256xbf16>, vector<8x256xf32> -> vector<8x256xf32>
    %67 = arith.addf %60, %66 : vector<8x256xf32>
    %c0_31 = arith.constant 0 : index
    %c127 = arith.constant 127 : index
    %68 = vector.load %arg5[%c0_31, %c127] : memref<4x512xbf16, #tpu.memory_space<vmem>>, vector<4x256xbf16>
    %69 = vector.broadcast %35 : vector<1x256xbf16> to vector<4x256xbf16>
    %70 = arith.mulf %68, %69 : vector<4x256xbf16>
    %c3 = arith.constant 3 : index
    %c0_32 = arith.constant 0 : index
    %c0_33 = arith.constant 0 : index
    %71 = vector.load %arg2[%c3, %c0_32, %c0_33] : memref<9x8x4xbf16, #tpu.memory_space<vmem>>, vector<1x8x4xbf16>
    %72 = vector.shape_cast %71 : vector<1x8x4xbf16> to vector<8x4xbf16>
    %cst_34 = arith.constant dense<0.000000e+00> : vector<8x256xf32>
    %73 = tpu.matmul %72, %70, %cst_34 {dimension_numbers = #tpu.dot_dimension_numbers<[1], [0], [0], [1], [0, 0, 1, 1], [], []>} : vector<8x4xbf16>, vector<4x256xbf16>, vector<8x256xf32> -> vector<8x256xf32>
    %74 = arith.addf %67, %73 : vector<8x256xf32>
    %c0_35 = arith.constant 0 : index
    %c128_36 = arith.constant 128 : index
    %75 = vector.load %arg5[%c0_35, %c128_36] : memref<4x512xbf16, #tpu.memory_space<vmem>>, vector<4x256xbf16>
    %c4 = arith.constant 4 : index
    %c0_37 = arith.constant 0 : index
    %c0_38 = arith.constant 0 : index
    %76 = vector.load %arg2[%c4, %c0_37, %c0_38] : memref<9x8x4xbf16, #tpu.memory_space<vmem>>, vector<1x8x4xbf16>
    %77 = vector.shape_cast %76 : vector<1x8x4xbf16> to vector<8x4xbf16>
    %cst_39 = arith.constant dense<0.000000e+00> : vector<8x256xf32>
    %78 = tpu.matmul %77, %75, %cst_39 {dimension_numbers = #tpu.dot_dimension_numbers<[1], [0], [0], [1], [0, 0, 1, 1], [], []>} : vector<8x4xbf16>, vector<4x256xbf16>, vector<8x256xf32> -> vector<8x256xf32>
    %79 = arith.addf %74, %78 : vector<8x256xf32>
    %c0_40 = arith.constant 0 : index
    %c129 = arith.constant 129 : index
    %80 = vector.load %arg5[%c0_40, %c129] : memref<4x512xbf16, #tpu.memory_space<vmem>>, vector<4x256xbf16>
    %81 = vector.broadcast %47 : vector<1x256xbf16> to vector<4x256xbf16>
    %82 = arith.mulf %80, %81 : vector<4x256xbf16>
    %c5 = arith.constant 5 : index
    %c0_41 = arith.constant 0 : index
    %c0_42 = arith.constant 0 : index
    %83 = vector.load %arg2[%c5, %c0_41, %c0_42] : memref<9x8x4xbf16, #tpu.memory_space<vmem>>, vector<1x8x4xbf16>
    %84 = vector.shape_cast %83 : vector<1x8x4xbf16> to vector<8x4xbf16>
    %cst_43 = arith.constant dense<0.000000e+00> : vector<8x256xf32>
    %85 = tpu.matmul %84, %82, %cst_43 {dimension_numbers = #tpu.dot_dimension_numbers<[1], [0], [0], [1], [0, 0, 1, 1], [], []>} : vector<8x4xbf16>, vector<4x256xbf16>, vector<8x256xf32> -> vector<8x256xf32>
    %86 = arith.addf %79, %85 : vector<8x256xf32>
    %c0_44 = arith.constant 0 : index
    %c143 = arith.constant 143 : index
    %87 = vector.load %arg5[%c0_44, %c143] : memref<4x512xbf16, #tpu.memory_space<vmem>>, vector<4x256xbf16>
    %88 = vector.broadcast %35 : vector<1x256xbf16> to vector<4x256xbf16>
    %89 = arith.mulf %87, %88 : vector<4x256xbf16>
    %c6 = arith.constant 6 : index
    %c0_45 = arith.constant 0 : index
    %c0_46 = arith.constant 0 : index
    %90 = vector.load %arg2[%c6, %c0_45, %c0_46] : memref<9x8x4xbf16, #tpu.memory_space<vmem>>, vector<1x8x4xbf16>
    %91 = vector.shape_cast %90 : vector<1x8x4xbf16> to vector<8x4xbf16>
    %cst_47 = arith.constant dense<0.000000e+00> : vector<8x256xf32>
    %92 = tpu.matmul %91, %89, %cst_47 {dimension_numbers = #tpu.dot_dimension_numbers<[1], [0], [0], [1], [0, 0, 1, 1], [], []>} : vector<8x4xbf16>, vector<4x256xbf16>, vector<8x256xf32> -> vector<8x256xf32>
    %93 = arith.addf %86, %92 : vector<8x256xf32>
    %c0_48 = arith.constant 0 : index
    %c144 = arith.constant 144 : index
    %94 = vector.load %arg5[%c0_48, %c144] : memref<4x512xbf16, #tpu.memory_space<vmem>>, vector<4x256xbf16>
    %c7 = arith.constant 7 : index
    %c0_49 = arith.constant 0 : index
    %c0_50 = arith.constant 0 : index
    %95 = vector.load %arg2[%c7, %c0_49, %c0_50] : memref<9x8x4xbf16, #tpu.memory_space<vmem>>, vector<1x8x4xbf16>
    %96 = vector.shape_cast %95 : vector<1x8x4xbf16> to vector<8x4xbf16>
    %cst_51 = arith.constant dense<0.000000e+00> : vector<8x256xf32>
    %97 = tpu.matmul %96, %94, %cst_51 {dimension_numbers = #tpu.dot_dimension_numbers<[1], [0], [0], [1], [0, 0, 1, 1], [], []>} : vector<8x4xbf16>, vector<4x256xbf16>, vector<8x256xf32> -> vector<8x256xf32>
    %98 = arith.addf %93, %97 : vector<8x256xf32>
    %c0_52 = arith.constant 0 : index
    %c145 = arith.constant 145 : index
    %99 = vector.load %arg5[%c0_52, %c145] : memref<4x512xbf16, #tpu.memory_space<vmem>>, vector<4x256xbf16>
    %100 = vector.broadcast %47 : vector<1x256xbf16> to vector<4x256xbf16>
    %101 = arith.mulf %99, %100 : vector<4x256xbf16>
    %c8 = arith.constant 8 : index
    %c0_53 = arith.constant 0 : index
    %c0_54 = arith.constant 0 : index
    %102 = vector.load %arg2[%c8, %c0_53, %c0_54] : memref<9x8x4xbf16, #tpu.memory_space<vmem>>, vector<1x8x4xbf16>
    %103 = vector.shape_cast %102 : vector<1x8x4xbf16> to vector<8x4xbf16>
    %cst_55 = arith.constant dense<0.000000e+00> : vector<8x256xf32>
    %104 = tpu.matmul %103, %101, %cst_55 {dimension_numbers = #tpu.dot_dimension_numbers<[1], [0], [0], [1], [0, 0, 1, 1], [], []>} : vector<8x4xbf16>, vector<4x256xbf16>, vector<8x256xf32> -> vector<8x256xf32>
    %105 = arith.addf %98, %104 : vector<8x256xf32>
    %c0_56 = arith.constant 0 : index
    %c0_57 = arith.constant 0 : index
    %c0_58 = arith.constant 0 : index
    %106 = vector.load %arg3[%c0_56, %c0_57, %c0_58] : memref<1x8x256xf32, #tpu.memory_space<vmem>>, vector<1x8x256xf32>
    %107 = vector.shape_cast %106 : vector<1x8x256xf32> to vector<8x256xf32>
    %108 = vector.shape_cast %105 : vector<8x256xf32> to vector<1x8x256xf32>
    tpu.vector_store %arg3[%c0_56, %c0_57, %c0_58], %108 {strides = array<i32>} : memref<1x8x256xf32, #tpu.memory_space<vmem>>, vector<1x8x256xf32>,
    %cst_59 = arith.constant dense<0.000000e+00> : vector<8xf32>
    %109 = vector.multi_reduction <add>, %105, %cst_59 [1] : vector<8x256xf32> to vector<8xf32>
    %110 = vector.shape_cast %109 : vector<8xf32> to vector<8x1xf32>
    %cst_60 = arith.constant 3.906250e-03 : f32
    %111 = vector.broadcast %cst_60 : f32 to vector<8x1xf32>
    %112 = arith.mulf %110, %111 : vector<8x1xf32>
    %113 = vector.broadcast %112 : vector<8x1xf32> to vector<8x256xf32>
    %114 = arith.subf %105, %113 : vector<8x256xf32>
    %115 = arith.mulf %114, %114 : vector<8x256xf32>
    %cst_61 = arith.constant dense<0.000000e+00> : vector<8xf32>
    %116 = vector.multi_reduction <add>, %115, %cst_61 [1] : vector<8x256xf32> to vector<8xf32>
    %117 = vector.shape_cast %116 : vector<8xf32> to vector<8x1xf32>
    %118 = tpu.concatenate %112, %117 in 1 : vector<8x1xf32>, vector<8x1xf32> -> vector<8x2xf32>
    %c0_62 = arith.constant 0 : index
    %c0_63 = arith.constant 0 : index
    %c0_64 = arith.constant 0 : index
    %119 = vector.load %arg4[%c0_62, %c0_63, %c0_64] : memref<1x8x2xf32, #tpu.memory_space<vmem>>, vector<1x8x2xf32>
    %120 = vector.shape_cast %119 : vector<1x8x2xf32> to vector<8x2xf32>
    %121 = vector.shape_cast %118 : vector<8x2xf32> to vector<1x8x2xf32>
    tpu.vector_store %arg4[%c0_62, %c0_63, %c0_64], %121 {strides = array<i32>} : memref<1x8x2xf32, #tpu.memory_space<vmem>>, vector<1x8x2xf32>,
    return
  }
  func.func @transform_0(%arg0: i32) -> (i32, i32, i32) {
    %c0_i32 = arith.constant 0 : i32
    %c0_i32_0 = arith.constant 0 : i32
    %c0_i32_1 = arith.constant 0 : i32
    return %arg0, %c0_i32, %c0_i32_0 : i32, i32, i32
  }
  func.func @transform_1(%arg0: i32) -> (i32, i32, i32) {
    %c0_i32 = arith.constant 0 : i32
    %c0_i32_0 = arith.constant 0 : i32
    %c0_i32_1 = arith.constant 0 : i32
    %c0_i32_2 = arith.constant 0 : i32
    return %c0_i32, %c0_i32_0, %c0_i32_1 : i32, i32, i32
  }
  func.func @transform_2(%arg0: i32) -> (i32, i32, i32) {
    %c0_i32 = arith.constant 0 : i32
    %c0_i32_0 = arith.constant 0 : i32
    %c0_i32_1 = arith.constant 0 : i32
    return %arg0, %c0_i32, %c0_i32_0 : i32, i32, i32
  }
  func.func @transform_3(%arg0: i32) -> (i32, i32, i32) {
    %c0_i32 = arith.constant 0 : i32
    %c0_i32_0 = arith.constant 0 : i32
    %c0_i32_1 = arith.constant 0 : i32
    return %arg0, %c0_i32, %c0_i32_0 : i32, i32, i32
  }
}

</mosaic_0001>

<bundles_post_ra>
// kernel: tpu_custom_call.1
= control target key start
LH: loop header
LB: loop body
LE: loop exit
PB: predicated region body
PF: predicated region fallthrough
CT: control target
= control target key end

     0   :  { %9 = vsyncpa [#allocation4], 0  ;;  %s1386_s0 = inlined_call_operand.vmem [shape: bf16[2,4,256], index: 0, kind: input, shape index: {}]   ;;  %s1387_s1 = inlined_call_operand.vmem [shape: bf16[9,8,4], index: 1, kind: input, shape index: {}]   ;;  %s1388_s2 = inlined_call_operand.hbm [shape: f32[2,8,256], index: 2, kind: output, shape index: {0}]   ;;  %s1389_s3 = inlined_call_operand.vmem [shape: f32[2,8,2], index: 3, kind: output, shape index: {1}]  }
   0x1   :  { %11 = vsyncpa [#allocation4 + $0x1], 0  ;;  %s1177_s12 = smov 0   ;;  %s1179_s13 = smov 0  }
   0x2   :  { %s1181_s14 = smov 0   ;;  %s1183_s15 = smov 0  }
   0x3 LB: > { %s1198_s16 = sadd.s32 4294967295, %s1145_s15   ;;  %s989_s17 = sadd.s32 4294967294, %s1145_s15   ;;  %s1145_s15 = sphi %s1183_s15, %s1395_s15   ;;  %s1141_s14 = sphi %s1181_s14, %s1394_s14   ;;  %s1137_s13 = sphi %s1179_s13, %s1393_s13   ;;  %s1133_s12 = sphi %s1177_s12, %s1392_s12  }
   0x4   : > { %s1202_s18 = sadd.s32 1, %s1145_s15   ;;  %s71_s19 = sadd.s32 1, %s1141_s14 }
   0x5   : > { %s68_s20 = ssub.s32 %s1145_s15, %s1202_s18  ;;  %p81_p0 = scmp.ne.s32.totalorder %s1141_s14, %s1137_s13 }
   0x6   : > { %p69_p1 = scmp.eq.s32.totalorder %s68_s20, 0  ;;  %p82_p2 = scmp.eq.s32.totalorder %s1198_s16, 1 }
   0x7   : > { %p87_p3 = scmp.ne.s32.totalorder %s1137_s13, %s1133_s12  ;;  %p88_p4 = scmp.eq.s32.totalorder %s989_s17, 1 }
   0x8   : > { %s1213_s21 = scalar_select %p69_p1, %s1141_s14, %s71_s19  }
   0x9   : > { %p1215_p5 = por %p82_p2, %p81_p0  ;;  %p1219_p6 = por %p88_p4, %p87_p3 }
   0xa   : > { %p992_p7 = scmp.ge.s32.totalorder %s1145_s15, 1  ;;  %p143_p8 = scmp.lt.s32.totalorder %s1145_s15, 3 }
   0xc   : > { %p144_p9 = pnand %p992_p7, %p143_p8 }
   0xd   : > { %s1148_s24 = smov (!%p144_p9), 111   ;;  %s1149_s25 = smov (!%p144_p9), 127  }
   0xe   : > { %147 = sbr.rel (%p144_p9) target bundleno = 779 (0x30b), region = 28  ;;  %s1150_s26 = smov (!%p144_p9), 15  }
   0xf   : > { %s1151_s27 = smov (!%p144_p9), 113   ;;  %s1152_s28 = smov (!%p144_p9), 1  }
  0x10   : > { %p171_p10 = scmp.lt.s32.totalorder (!%p144_p9), %s1198_s16, 1  ;;  %s1154_s7 = smov (!%p144_p9), 17  }
  0x11   : > { %s1155_s8 = smov (!%p144_p9), 16   ;;  %s1156_s9 = smov (!%p144_p9), 112  }
  0x12   : > { %s162_s11 = sand.u32 (!%p144_p9), 1, %s1137_s13   ;;  %s1033_s20 = sshll.u32 (!%p144_p9), %s1198_s16, 4 }
  0x13   : > { %v185_v0 = vlaneseq  ;;  %v1147_v9 = vmov 0.0   ;;  %vm246_vm3 = vcmask 1043456   ;;  %s1236_s29 = scalar_select %p171_p10, %s1198_s16, 1  ;;  %v1153_v19 = vmov 0  }
  0x14   : > { %181 = vst [vmem:[#allocation2] sm:$0x3] %v1153_v19  ;;  %vm251_vm5 = vcmask 908288   ;;  %vm388_vm6 = vcmask 924672   ;;  %vm465_vm7 = vcmask 1039360   ;;  %vm496_vm8 = vcmask 7168  }
  0x15   : > { %v186_v1 = vand.u32 127, %v185_v0  ;;  %s1032_s30 = sshll.u32 %s1236_s29, 2  ;;  %182 = vst [vmem:[#allocation2 + $0x6] sm:$0x3] %v1153_v19  ;;  %vm419_vm9 = vcmask 121856   ;;  %vm338_vm10 = vcmask 138240  }
  0x16   : > { %s175_s6 = scalar_lea.vmem %s1386_s0, %s1032_s30  ;;  %vm289_vm11 = vcmask 130048   ;;  %vm296_vm12 = vcmask 1041408   ;;  %vm292_vm13 = vcmask 31744   ;;  %vm749_vm14 = vcmask 916480   ;;  %s993_s17 = sshll.u32 %s162_s11, 4 }
  0x17   : > { %v187_v2 = vadd.s32 128, %v186_v1  ;;  %v192_v3 = vand.u32 15, %v186_v1  ;;  %v183_v18 = vld [vmem:[%s175_s6] sm:$0xf]  ;;  %s164_s19 = scalar_lea.vmem [#allocation3], %s993_s17  ;;  %s883_s30 = scalar_lea.sflag [#allocation4], %s162_s11 }
  0x18   : > { %184 = vst [vmem:[#allocation2 + $0x2] sm:$0xf] %v183_v18  ;;  %s1103_s16 = scalar_lea.hbm %s1388_s2, 32 }
  0x19   : > { %v199_v4 = vand.u32 15, %v187_v2  ;;  %v212_v5 = vadd.s32 4294967295, %v192_v3  ;;  %v225_v8 = vadd.s32 1, %v192_v3 }
  0x1b   : > { %v213_v6 = vadd.s32 4294967295, %v199_v4  ;;  %vm214_vm0 = vcmp.ge.s32.totalorder %v212_v5, 0  ;;  %v226_v7 = vadd.s32 1, %v199_v4  ;;  %vm229_vm4 = vcmp.lt.s32.totalorder %v225_v8, 16 }
  0x1c   : > { %v997_v10 = vsel %vm214_vm0, 1.0, %v1147_v9  ;;  %v999_v16 = vsel %vm229_vm4, 1.0, %v1147_v9 }
  0x1d   : > { %vm215_vm1 = vcmp.ge.s32.totalorder %v213_v6, 0  ;;  %vm230_vm2 = vcmp.lt.s32.totalorder %v226_v7, 16 }
  0x1e   : > { %v998_v11 = vsel %vm215_vm1, 1.0, %v1147_v9  ;;  %v1000_v13 = vsel %vm230_vm2, 1.0, %v1147_v9 }
  0x1f   : > { %v245_v12 = vrot.slane %v998_v11, 4  ;;  %v383_v15 = vrot.slane %v1000_v13, 4  ;;  %v238_v20 = vld [vmem:[#allocation2] sm:$0x3f] }
  0x20   : > { %v240_v21 = vunpack.c.h.bf16 %v238_v20  ;;  %v239_v23 = vunpack.c.l.bf16 %v238_v20  ;;  %v272_v29 = vld [vmem:[#allocation2] sm:$0x3f] }
  0x21   : > { %v247_v14 = vsel %vm246_vm3, %v997_v10, %v245_v12  ;;  %v1228_v17 = vsel %vm246_vm3, %v999_v16, %v383_v15  ;;  %v376_v31 = vld [vmem:[#allocation2] sm:$0x3f] }
  0x22   : > { %248 = vrot.lane.b32.xlu0 %v247_v14, %s1148_s24  ;;  %462 = vrot.lane.b32.xlu1 %v247_v14, %s1149_s25  ;;  %v378_v36 = vunpack.c.h.bf16 %v376_v31  ;;  %v377_v37 = vunpack.c.l.bf16 %v376_v31  ;;  %v459_v42 = vld [vmem:[#allocation2] sm:$0x3f] }
  0x23   : > { %658 = vrot.lane.b32.xlu2 %v247_v14, %s1150_s26  ;;  %v460_v47 = vunpack.c.l.bf16 %v459_v42  ;;  %v461_v48 = vunpack.c.h.bf16 %v459_v42  ;;  %v578_v58 = vld [vmem:[#allocation2 + $0x2] sm:$0x3f] }
  0x24   : > { %v580_v59 = vunpack.c.h.bf16 %v578_v58  ;;  %v536_v0 = vld [vmem:[#allocation2 + $0x2] sm:$0xf]  ;;  %v579_v5 = vunpack.c.l.bf16 %v578_v58 }
  0x25   : > { %v655_v7 = vld [vmem:[#allocation2 + $0x2] sm:$0x3f] }
  0x26   : > { %v657_v9 = vunpack.c.h.bf16 %v655_v7  ;;  %v656_v19 = vunpack.c.l.bf16 %v655_v7 }
  0x2a   : > { %385 = vrot.lane.b32.xlu0 %v1228_v17, %s1151_s27  ;;  %581 = vrot.lane.b32.xlu1 %v1228_v17, %s1152_s28 }
  0x7d   : > { %v659_v6 = vpop.permute.xlu2 %658 }
  0x7e   : > { %v660_v12 = vrot.slane %v659_v6, 4 }
  0x80   : > { %v666_v15 = vmul.f32 %v660_v12, %v657_v9  ;;  %v662_v20 = vsel %vm419_vm9, %v660_v12, %v659_v6  ;;  %v1006_v12 = vld [vmem:[%s1387_s1 + $0x8] sm:$0xf] }
  0x94   : > { %v249_v22 = vpop.permute.xlu0 %248  ;;  %v463_v39 = vpop.permute.xlu1 %462 }
  0x95   : > { %v250_v24 = vrot.slane %v249_v22, 4  ;;  %v464_v43 = vrot.slane %v463_v39, 4 }
  0x97   : > { %v252_v25 = vsel %vm251_vm5, %v250_v24, %v249_v22  ;;  %v256_v26 = vmul.f32 %v250_v24, %v240_v21  ;;  %v466_v49 = vsel %vm465_vm7, %v464_v43, %v463_v39  ;;  %v470_v53 = vmul.f32 %v464_v43, %v461_v48  ;;  %v789_v39 = vld [vmem:[#allocation2 + $0x2] sm:$0x3f] }
  0x98   : > { %v255_v27 = vmul.f32 %v252_v25, %v239_v23  ;;  %v469_v50 = vmul.f32 %v466_v49, %v460_v47  ;;  %v665_v21 = vmul.f32 %v662_v20, %v656_v19  ;;  %v1009_v20 = vld [vmem:[%s1387_s1 + $0xc] sm:$0xf] }
  0x99   : > { %261 = vst [vmem:[#allocation1 + $0x10] ss:$2 sm:$0xff] %v256_v26 }
  0x9a   : > { %259 = vst [vmem:[#allocation1] ss:$2 sm:$0xff] %v255_v27 }
  0x9c   : > { %v386_v28 = vpop.permute.xlu0 %385  ;;  %v582_v57 = vpop.permute.xlu1 %581 }
  0x9d   : > { %v387_v32 = vrot.slane %v386_v28, 4  ;;  %v583_v62 = vrot.slane %v582_v57, 4 }
  0x9f   : > { %v389_v38 = vsel %vm388_vm6, %v387_v32, %v386_v28  ;;  %v393_v40 = vmul.f32 %v387_v32, %v378_v36  ;;  %v589_v1 = vmul.f32 %v583_v62, %v580_v59  ;;  %v585_v8 = vsel %vm496_vm8, %v583_v62, %v582_v57  ;;  %v1001_v59 = vld [vmem:[%s1387_s1 + $0x4] sm:$0xf] }
  0xa0   : > { %v264_v30 = vld.sshfl [vmem:[#allocation1 + $0x10] sm:$0xff pattern:$0x75316420]  ;;  %v392_v41 = vmul.f32 %v389_v38, %v377_v37  ;;  %v588_v13 = vmul.f32 %v585_v8, %v579_v5 }
  0xa1   : > { %v262_v33 = vld.sshfl [vmem:[#allocation1] sm:$0xff pattern:$0x75316420]  ;;  %v263_v34 = vld.sshfl [vmem:[#allocation1 + $0x8] sm:$0xff pattern:$0x75316420]  ;;  %v270_v51 = vpack.c.bf16 %v264_v30, %v264_v30 }
  0xa2   : > { %276 = vst [vmem:[#allocation1] ss:$4 sm:$0xff] %v272_v29  ;;  %v268_v35 = vpack.c.bf16 %v262_v33, %v262_v33  ;;  %v269_v52 = vpack.c.bf16 %v263_v34, %v263_v34  ;;  %v732_v29 = vld [vmem:[#allocation2 + $0x2] sm:$0x3f] }
  0xa4   : > { %332 = vrot.lane.b32.xlu2 %v268_v35, %s1154_s7 }
  0xa9   : > { %v281_v44 = vld.sshfl [vmem:[#allocation1 + $0x10] sm:$0xff pattern:$0x73625140]  ;;  %v279_v45 = vld.sshfl [vmem:[#allocation1 + $0x8] sm:$0xff pattern:$0x73625140] }
  0xaa   : > { %287 = vrot.lane.b32.xlu1 %v281_v44, %s1155_s8  ;;  %398 = vst [vmem:[#allocation1 + $0x10] ss:$2 sm:$0xff] %v393_v40  ;;  %285 = vrot.lane.b32.xlu0 %v279_v45, %s1155_s8  ;;  %v277_v46 = vld.sshfl [vmem:[#allocation1] sm:$0xff pattern:$0x73625140]  ;;  %v791_v40 = vunpack.c.h.bf16 %v789_v39 }
  0xab   : > { %396 = vst [vmem:[#allocation1] ss:$2 sm:$0xff] %v392_v41  ;;  %v790_v41 = vunpack.c.l.bf16 %v789_v39 }
  0xac   : > { %283 = vrot.lane.b32.xlu2 %v277_v46, %s1155_s8 }
  0xb1   : > { %v401_v54 = vld.sshfl [vmem:[#allocation1 + $0x10] sm:$0xff pattern:$0x75316420] }
  0xb2   : > { %336 = vrot.lane.b32.xlu1 %v270_v51, %s1154_s7  ;;  %334 = vrot.lane.b32.xlu0 %v269_v52, %s1154_s7  ;;  %v400_v55 = vld.sshfl [vmem:[#allocation1 + $0x8] sm:$0xff pattern:$0x75316420]  ;;  %v399_v56 = vld.sshfl [vmem:[#allocation1] sm:$0xff pattern:$0x75316420]  ;;  %v407_v63 = vpack.c.bf16 %v401_v54, %v401_v54 }
  0xb3   : > { %473 = vst [vmem:[#allocation1] ss:$2 sm:$0xff] %v469_v50  ;;  %v406_v60 = vpack.c.bf16 %v400_v55, %v400_v55  ;;  %v405_v61 = vpack.c.bf16 %v399_v56, %v399_v56 }
  0xb4   : > { %792 = vrot.lane.b32.xlu2 %v1228_v17, %s1154_s7  ;;  %475 = vst [vmem:[#allocation1 + $0x10] ss:$2 sm:$0xff] %v470_v53 }
  0xba   : > { %415 = vrot.lane.b32.xlu1 %v406_v60, %s1150_s26  ;;  %413 = vrot.lane.b32.xlu0 %v405_v61, %s1150_s26  ;;  %v477_v2 = vld.sshfl [vmem:[#allocation1 + $0x8] sm:$0xff pattern:$0x75316420]  ;;  %v476_v3 = vld.sshfl [vmem:[#allocation1] sm:$0xff pattern:$0x75316420] }
  0xbb   : > { %v478_v4 = vld.sshfl [vmem:[#allocation1 + $0x10] sm:$0xff pattern:$0x75316420]  ;;  %v483_v10 = vpack.c.bf16 %v477_v2, %v477_v2  ;;  %v482_v11 = vpack.c.bf16 %v476_v3, %v476_v3  ;;  %v271_v2 = vld [vmem:[%s1387_s1] sm:$0xf] }
  0xbc   : > { %417 = vrot.lane.b32.xlu2 %v407_v63, %s1150_s26  ;;  %540 = vst [vmem:[#allocation1] ss:$4 sm:$0xff] %v536_v0  ;;  %v484_v14 = vpack.c.bf16 %v478_v4, %v478_v4  ;;  %s898_s26 = scalar_lea.hbm %s1388_s2, %s1033_s20 }
  0xbd   : > { %594 = vst [vmem:[#allocation1 + $0x10] ss:$2 sm:$0xff] %v589_v1 }
  0xc2   : > { %492 = vrot.lane.b32.xlu1 %v483_v10, %s1152_s28  ;;  %490 = vrot.lane.b32.xlu0 %v482_v11, %s1152_s28 }
  0xc3   : > { %v1256_v16 = vld.sshfl [vmem:[#allocation1] sm:$0xff pattern:$0x73625140]  ;;  %v1258_v17 = vld.sshfl [vmem:[#allocation1 + $0x8] sm:$0xff pattern:$0x73625140] }
  0xc4   : > { %v597_v18 = vld.sshfl [vmem:[#allocation1 + $0x10] sm:$0xff pattern:$0x75316420]  ;;  %592 = vst [vmem:[#allocation1] ss:$2 sm:$0xff] %v588_v13  ;;  %494 = vrot.lane.b32.xlu2 %v484_v14, %s1152_s28  ;;  %v546_v10 = vsel %vm296_vm12, %v1256_v16, 0 }
  0xc5   : > { %671 = vst [vmem:[#allocation1 + $0x10] ss:$2 sm:$0xff] %v666_v15  ;;  %v603_v22 = vpack.c.bf16 %v597_v18, %v597_v18  ;;  %v548_v11 = vsel %vm296_vm12, %v1258_v17, 0  ;;  %s902_s28 = sshll.u32 %s898_s26, 4  ;;  %s903_s28 = int_to_ptr.hbm [resolvable:$true] %s902_s28 }
  0xc6   : > { %s1097_s4 = sshra.s32 %s903_s28, 4  ;;  %s1098_s4 = int_to_ptr.hbm [resolvable:$true] %s1097_s4 }
  0xc7   : > { %s1099_s5 = scalar_lea.hbm %s1098_s4, 16  ;;  %p1104_p0 = scmp.lt.s32.totalorder %s1098_s4, %s1388_s2 }
  0xc8   : > { %p1100_p11 = scmp.ne.s32.totalorder %s1098_s4, %s1099_s5  ;;  %p1105_p1 = scmp.lt.s32.totalorder %s1103_s16, %s1099_s5 }
  0xca   : > { %p1101_p12 = pnand %p1100_p11, %p1215_p5  ;;  %p1106_p2 = por %p1105_p1, %p1104_p0 }
  0xcb   : > { %v596_v23 = vld.sshfl [vmem:[#allocation1 + $0x8] sm:$0xff pattern:$0x75316420]  ;;  %v595_v24 = vld.sshfl [vmem:[#allocation1] sm:$0xff pattern:$0x75316420] }
  0xcc   : > { %v602_v25 = vpack.c.bf16 %v596_v23, %v596_v23  ;;  %v601_v26 = vpack.c.bf16 %v595_v24, %v595_v24  ;;  %669 = vst [vmem:[#allocation1] ss:$2 sm:$0xff] %v665_v21  ;;  %613 = vrot.lane.b32.xlu2 %v603_v22, %s1149_s25  ;;  %v674_v27 = vld.sshfl [vmem:[#allocation1 + $0x10] sm:$0xff pattern:$0x75316420]  ;;  %p1102_p13 = pneg %p1101_p12 }
  0xcd   : > { %v680_v28 = vpack.c.bf16 %v674_v27, %v674_v27  ;;  %v1012_v22 = vld [vmem:[%s1387_s1 + $0x10] sm:$0xf] }
  0xce   : > { %611 = vrot.lane.b32.xlu1 %v602_v25, %s1149_s25  ;;  %609 = vrot.lane.b32.xlu0 %v601_v26, %s1149_s25  ;;  %p1107_p3 = pnand %p1106_p2, %p1102_p13 }
  0xd3   : > { %v673_v30 = vld.sshfl [vmem:[#allocation1 + $0x8] sm:$0xff pattern:$0x75316420]  ;;  %v672_v31 = vld.sshfl [vmem:[#allocation1] sm:$0xff pattern:$0x75316420] }
  0xd4   : > { %v679_v32 = vpack.c.bf16 %v673_v30, %v673_v30  ;;  %v678_v33 = vpack.c.bf16 %v672_v31, %v672_v31  ;;  %736 = vst [vmem:[#allocation1] ss:$4 sm:$0xff] %v732_v29  ;;  %690 = vrot.lane.b32.xlu2 %v680_v28, %s1151_s27  ;;  %v1015_v30 = vld [vmem:[%s1387_s1 + $0x14] sm:$0xf] }
  0xd6   : > { %688 = vrot.lane.b32.xlu1 %v679_v32, %s1151_s27  ;;  %686 = vrot.lane.b32.xlu0 %v678_v33, %s1151_s27  ;;  %s900_s27 = sshll.u32 %s164_s19, 4  ;;  %s901_s27 = int_to_ptr.vmem [resolvable:$true] %s900_s27 }
  0xdb   : > { %v739_v34 = vld.sshfl [vmem:[#allocation1 + $0x8] sm:$0xff pattern:$0x73625140]  ;;  %v737_v35 = vld.sshfl [vmem:[#allocation1] sm:$0xff pattern:$0x73625140] }
  0xdc   : > { %v741_v36 = vld.sshfl [vmem:[#allocation1 + $0x10] sm:$0xff pattern:$0x73625140] }
  0xdd   : > { %747 = vrot.lane.b32.xlu2 %v741_v36, %s1156_s9 }
  0xde   : > { %745 = vrot.lane.b32.xlu1 %v739_v34, %s1156_s9  ;;  %743 = vrot.lane.b32.xlu0 %v737_v35, %s1156_s9 }
  0xfe   : > { %v333_v37 = vpop.permute.xlu2 %332 }
 0x106   : > { %v284_v38 = vpop.permute.xlu2 %283 }
 0x10e   : > { %v793_v42 = vpop.permute.xlu2 %792 }
 0x10f   : > { %v794_v43 = vrot.slane %v793_v42, 4 }
 0x111   : > { %v796_v44 = vsel %vm338_vm10, %v794_v43, %v793_v42  ;;  %v800_v45 = vmul.f32 %v794_v43, %v791_v40 }
 0x112   : > { %v799_v46 = vmul.f32 %v796_v44, %v790_v41 }
 0x113   : > { %805 = vst [vmem:[#allocation1 + $0x10] ss:$2 sm:$0xff] %v800_v45  ;;  %v1021_v45 = vld [vmem:[%s1387_s1 + $0x1c] sm:$0xf] }
 0x114   : > { %803 = vst [vmem:[#allocation1] ss:$2 sm:$0xff] %v799_v46 }
 0x116   : > { %v418_v3 = vpop.permute.xlu2 %417 }
 0x11a   : > { %v808_v47 = vld.sshfl [vmem:[#allocation1 + $0x10] sm:$0xff pattern:$0x75316420] }
 0x11b   : > { %v814_v48 = vpack.c.bf16 %v808_v47, %v808_v47  ;;  %v807_v49 = vld.sshfl [vmem:[#allocation1 + $0x8] sm:$0xff pattern:$0x75316420]  ;;  %v806_v50 = vld.sshfl [vmem:[#allocation1] sm:$0xff pattern:$0x75316420] }
 0x11c   : > { %v288_v51 = vpop.permute.xlu1 %287  ;;  %v286_v52 = vpop.permute.xlu0 %285  ;;  %v813_v53 = vpack.c.bf16 %v807_v49, %v807_v49  ;;  %v812_v54 = vpack.c.bf16 %v806_v50, %v806_v50 }
 0x11d   : > { %824 = vrot.lane.b32.xlu2 %v814_v48, %s1148_s24  ;;  %v290_v55 = vsel %vm289_vm11, %v284_v38, %v286_v52  ;;  %v291_v56 = vsel %vm289_vm11, %v286_v52, %v288_v51  ;;  %v1018_v38 = vld [vmem:[%s1387_s1 + $0x18] sm:$0xf] }
 0x11e   : > { %822 = vrot.lane.b32.xlu1 %v813_v53, %s1148_s24  ;;  %820 = vrot.lane.b32.xlu0 %v812_v54, %s1148_s24  ;;  %v298_v57 = vsel %vm296_vm12, %v290_v55, 0  ;;  %v301_v58 = vsel %vm296_vm12, %v291_v56, 0  ;;  %v495_v13 = vpop.permute.xlu2 %494  ;;  %v1024_v53 = vld [vmem:[%s1387_s1 + $0x20] sm:$0xf] }
 0x11f   : > { %310 = vmatpush.bf16.msra.mxu0 %v298_v57  ;;  %323 = vmatpush.bf16.msra.mxu1 %v301_v58 }
 0x122   : > { %1002 = vmatmul.msk.bf16.vlgmr.msra.gmra.mxu0 %vm292_vm13, %v1001_v59  ;;  %1003 = vmatmul.msk.bf16.vlgmr.msra.gmra.mxu1 %vm292_vm13, %v1001_v59 }
 0x124   : > { %v337_v60 = vpop.permute.xlu1 %336  ;;  %v335_v61 = vpop.permute.xlu0 %334 }
 0x125   : > { %v339_v62 = vsel %vm338_vm10, %v333_v37, %v335_v61  ;;  %v340_v63 = vsel %vm338_vm10, %v335_v61, %v337_v60 }
 0x126   : > { %v345_v0 = vsel %vm296_vm12, %v339_v62, 0  ;;  %v348_v1 = vsel %vm296_vm12, %v340_v63, 0  ;;  %v614_v21 = vpop.permute.xlu2 %613 }
 0x127   : > { %357 = vmatpush.bf16.msra.mxu2 %v345_v0  ;;  %370 = vmatpush.bf16.msra.mxu3 %v348_v1 }
 0x12a   : > { %1004 = vmatmul.msk.bf16.vlgmr.msra.gmra.mxu2 %vm292_vm13, %v271_v2  ;;  %1005 = vmatmul.msk.bf16.vlgmr.msra.gmra.mxu3 %vm292_vm13, %v271_v2 }
 0x12c   : > { %v416_v4 = vpop.permute.xlu1 %415  ;;  %v414_v5 = vpop.permute.xlu0 %413 }
 0x12d   : > { %v420_v6 = vsel %vm419_vm9, %v414_v5, %v416_v4  ;;  %v421_v7 = vsel %vm419_vm9, %v416_v4, %v418_v3 }
 0x12e   : > { %v426_v8 = vsel %vm296_vm12, %v420_v6, 0  ;;  %v429_v9 = vsel %vm296_vm12, %v421_v7, 0  ;;  %v691_v29 = vpop.permute.xlu2 %690 }
 0x12f   : > { %438 = vmatpush.bf16.msrb.mxu0 %v426_v8  ;;  %451 = vmatpush.bf16.msrb.mxu1 %v429_v9 }
 0x132   : > { %1007 = vmatmul.msk.bf16.vlgmr.msrb.gmra.mxu0 %vm292_vm13, %v1006_v12  ;;  %1008 = vmatmul.msk.bf16.vlgmr.msrb.gmra.mxu1 %vm292_vm13, %v1006_v12 }
 0x133   : > { %557 = vmatpush.bf16.msra.mxu0 %v546_v10  ;;  %570 = vmatpush.bf16.msra.mxu1 %v548_v11 }
 0x134   : > { %v493_v14 = vpop.permute.xlu1 %492  ;;  %v491_v15 = vpop.permute.xlu0 %490 }
 0x135   : > { %v497_v18 = vsel %vm496_vm8, %v491_v15, %v493_v14  ;;  %v498_v16 = vsel %vm496_vm8, %v493_v14, %v495_v13 }
 0x136   : > { %v503_v19 = vsel %vm296_vm12, %v497_v18, 0  ;;  %v506_v17 = vsel %vm296_vm12, %v498_v16, 0 }
 0x137   : > { %515 = vmatpush.bf16.msrb.mxu2 %v503_v19  ;;  %528 = vmatpush.bf16.msrb.mxu3 %v506_v17  ;;  %v748_v37 = vpop.permute.xlu2 %747 }
 0x13a   : > { %1010 = vmatmul.msk.bf16.vlgmr.msrb.gmra.mxu2 %vm292_vm13, %v1009_v20  ;;  %1011 = vmatmul.msk.bf16.vlgmr.msrb.gmra.mxu3 %vm292_vm13, %v1009_v20 }
 0x140   : > { %v612_v23 = vpop.permute.xlu1 %611  ;;  %v610_v24 = vpop.permute.xlu0 %609 }
 0x141   : > { %v617_v25 = vsel %vm465_vm7, %v612_v23, %v614_v21  ;;  %v616_v26 = vsel %vm465_vm7, %v610_v24, %v612_v23 }
 0x142   : > { %v625_v27 = vsel %vm296_vm12, %v617_v25, 0  ;;  %v622_v28 = vsel %vm296_vm12, %v616_v26, 0  ;;  %1013 = vmatmul.msk.bf16.vlgmr.msra.gmra.mxu0 %vm292_vm13, %v1012_v22  ;;  %1014 = vmatmul.msk.bf16.vlgmr.msra.gmra.mxu1 %vm292_vm13, %v1012_v22 }
 0x143   : > { %634 = vmatpush.bf16.msra.mxu2 %v622_v28  ;;  %647 = vmatpush.bf16.msra.mxu3 %v625_v27 }
 0x148   : > { %v689_v31 = vpop.permute.xlu1 %688  ;;  %v687_v32 = vpop.permute.xlu0 %686 }
 0x149   : > { %v694_v33 = vsel %vm388_vm6, %v689_v31, %v691_v29  ;;  %v693_v34 = vsel %vm388_vm6, %v687_v32, %v689_v31 }
 0x14a   : > { %v702_v35 = vsel %vm296_vm12, %v694_v33, 0  ;;  %1016 = vmatmul.msk.bf16.vlgmr.msra.gmra.mxu2 %vm292_vm13, %v1015_v30  ;;  %1017 = vmatmul.msk.bf16.vlgmr.msra.gmra.mxu3 %vm292_vm13, %v1015_v30  ;;  %v699_v36 = vsel %vm296_vm12, %v693_v34, 0 }
 0x14b   : > { %724 = vmatpush.bf16.msrb.mxu1 %v702_v35  ;;  %711 = vmatpush.bf16.msrb.mxu0 %v699_v36 }
 0x150   : > { %v746_v39 = vpop.permute.xlu1 %745  ;;  %v744_v40 = vpop.permute.xlu0 %743 }
 0x151   : > { %v751_v41 = vsel %vm749_vm14, %v746_v39, %v748_v37  ;;  %v750_v42 = vsel %vm749_vm14, %v744_v40, %v746_v39 }
 0x152   : > { %v759_v43 = vsel %vm296_vm12, %v751_v41, 0  ;;  %v756_v44 = vsel %vm296_vm12, %v750_v42, 0  ;;  %1019 = vmatmul.msk.bf16.vlgmr.msrb.gmra.mxu0 %vm292_vm13, %v1018_v38  ;;  %1020 = vmatmul.msk.bf16.vlgmr.msrb.gmra.mxu1 %vm292_vm13, %v1018_v38 }
 0x153   : > { %781 = vmatpush.bf16.msrb.mxu3 %v759_v43  ;;  %768 = vmatpush.bf16.msrb.mxu2 %v756_v44 }
 0x15a   : > { %1022 = vmatmul.msk.bf16.vlgmr.msrb.gmra.mxu2 %vm292_vm13, %v1021_v45  ;;  %1023 = vmatmul.msk.bf16.vlgmr.msrb.gmra.mxu3 %vm292_vm13, %v1021_v45 }
 0x177   : > { %v825_v46 = vpop.permute.xlu2 %824 }
 0x190   : > { %v823_v47 = vpop.permute.xlu1 %822  ;;  %v821_v48 = vpop.permute.xlu0 %820 }
 0x191   : > { %v828_v49 = vsel %vm251_vm5, %v823_v47, %v825_v46  ;;  %v827_v50 = vsel %vm251_vm5, %v821_v48, %v823_v47 }
 0x192   : > { %v836_v51 = vsel %vm296_vm12, %v828_v49, 0  ;;  %v833_v52 = vsel %vm296_vm12, %v827_v50, 0 }
 0x193   : > { %845 = vmatpush.bf16.msra.mxu0 %v833_v52  ;;  %858 = vmatpush.bf16.msra.mxu1 %v836_v51 }
 0x196   : > { %1025 = vmatmul.msk.bf16.vlgmr.msra.gmra.mxu0 %vm292_vm13, %v1024_v53  ;;  %1026 = vmatmul.msk.bf16.vlgmr.msra.gmra.mxu1 %vm292_vm13, %v1024_v53 }
 0x19f   : > { %v312_v54 = vpop.f32.mrf.mxu0  ;;  %v325_v55 = vpop.f32.mrf.mxu1 }
 0x1a7   : > { %v314_v56 = vpop.f32.mrf.mxu0  ;;  %v327_v57 = vpop.f32.mrf.mxu1 }
 0x1ad   : > { %v359_v58 = vpop.f32.mrf.mxu2  ;;  %v372_v59 = vpop.f32.mrf.mxu3 }
 0x1ae   : > { %v360_v60 = vadd.f32 %v359_v58, %v312_v54  ;;  %v373_v61 = vadd.f32 %v372_v59, %v325_v55 }
 0x1af   : > { %v440_v62 = vpop.f32.mrf.mxu0  ;;  %v453_v63 = vpop.f32.mrf.mxu1 }
 0x1b0   : > { %v457_v0 = vadd.f32 %v440_v62, %v360_v60  ;;  %v458_v1 = vadd.f32 %v453_v63, %v373_v61 }
 0x1b5   : > { %v361_v2 = vpop.f32.mrf.mxu2  ;;  %v374_v3 = vpop.f32.mrf.mxu3 }
 0x1b7   : > { %v442_v4 = vpop.f32.mrf.mxu0  ;;  %v455_v5 = vpop.f32.mrf.mxu1 }
 0x1bd   : > { %v517_v6 = vpop.f32.mrf.mxu2  ;;  %v530_v7 = vpop.f32.mrf.mxu3 }
 0x1be   : > { %v534_v8 = vadd.f32 %v517_v6, %v457_v0  ;;  %v535_v9 = vadd.f32 %v530_v7, %v458_v1 }
 0x1bf   : > { %v559_v10 = vpop.f32.mrf.mxu0  ;;  %v572_v11 = vpop.f32.mrf.mxu1 }
 0x1c0   : > { %v576_v12 = vadd.f32 %v559_v10, %v534_v8  ;;  %v577_v13 = vadd.f32 %v572_v11, %v535_v9 }
 0x1c5   : > { %v519_v14 = vpop.f32.mrf.mxu2  ;;  %v532_v15 = vpop.f32.mrf.mxu3 }
 0x1c7   : > { %v561_v18 = vpop.f32.mrf.mxu0  ;;  %v574_v16 = vpop.f32.mrf.mxu1 }
 0x1cd   : > { %v636_v19 = vpop.f32.mrf.mxu2  ;;  %v649_v17 = vpop.f32.mrf.mxu3 }
 0x1ce   : > { %v653_v20 = vadd.f32 %v636_v19, %v576_v12  ;;  %v654_v21 = vadd.f32 %v649_v17, %v577_v13 }
 0x1cf   : > { %v713_v22 = vpop.f32.mrf.mxu0  ;;  %v726_v23 = vpop.f32.mrf.mxu1 }
 0x1d0   : > { %v730_v24 = vadd.f32 %v713_v22, %v653_v20  ;;  %v731_v25 = vadd.f32 %v726_v23, %v654_v21 }
 0x1d5   : > { %v638_v26 = vpop.f32.mrf.mxu2  ;;  %v651_v27 = vpop.f32.mrf.mxu3 }
 0x1d7   : > { %v715_v28 = vpop.f32.mrf.mxu0  ;;  %v728_v29 = vpop.f32.mrf.mxu1 }
 0x1dd   : > { %v770_v30 = vpop.f32.mrf.mxu2  ;;  %v783_v31 = vpop.f32.mrf.mxu3 }
 0x1de   : > { %v787_v34 = vadd.f32 %v770_v30, %v730_v24  ;;  %v788_v35 = vadd.f32 %v783_v31, %v731_v25 }
 0x1e5   : > { %v772_v32 = vpop.f32.mrf.mxu2  ;;  %v785_v33 = vpop.f32.mrf.mxu3 }
 0x213   : > { %v847_v36 = vpop.f32.mrf.mxu0  ;;  %v860_v37 = vpop.f32.mrf.mxu1 }
 0x214   : > { %v864_v38 = vadd.f32 %v847_v36, %v787_v34  ;;  %v865_v39 = vadd.f32 %v860_v37, %v788_v35 }
 0x216   : > { %866 = vst [vmem:[%s164_s19] sm:$0xff] %v864_v38  ;;  %v868_v40 = vadd.f32 %v865_v39, %v864_v38 }
 0x217   : > { %867 = vst [vmem:[%s164_s19 + $0x8] sm:$0xff] %v865_v39 }
 0x218   : > { %869 = vadd.xlane.f32.xlu0 %v868_v40 }
 0x21b   : > { %v849_v41 = vpop.f32.mrf.mxu0  ;;  %v862_v42 = vpop.f32.mrf.mxu1 }
 0x28b   : > { %v870_v43 = vpop.xlane.xlu0 %869 }
 0x28c   : > { %1110 = shalt.err (!%p1107_p3)
}
 0x28d   : > { %1034 = dma.vmem_to_hbm [thread:$0]  (%p1215_p5), %s901_s27, 256, %s903_s28, %s883_s30   ;;  %v871_v44 = vmul.f32 0.00390625, %v870_v43  ;;  %vm880_vm15 = vcmask 15360  }
 0x28e   : > { %s996_s10 = sshll.u32 %s1236_s29, 3 }
 0x28f   : > { %v872_v45 = vsub.f32 %v864_v38, %v871_v44  ;;  %v873_v46 = vsub.f32 %v865_v39, %v871_v44  ;;  %s179_s19 = scalar_lea.vmem %s1389_s3, %s996_s10 }
 0x291   : > { %v874_v47 = vmul.f32 %v872_v45, %v872_v45  ;;  %v875_v48 = vmul.f32 %v873_v46, %v873_v46 }
 0x293   : > { %v876_v49 = vadd.f32 %v875_v48, %v874_v47 }
 0x295   : > { %877 = vadd.xlane.f32.xlu1 %v876_v49 }
 0x308   : > { %v878_v50 = vpop.xlane.xlu1 %877 }
 0x309   : > { %v879_v51 = vsel %vm496_vm8, %v871_v44, %v878_v50 }
 0x30a   : > { %881 = vst.msk [vmem:[%s179_s19] sm:$0xff] %vm880_vm15, %v879_v51 }
 0x30b PF: > { %p1040_p4 = scmp.ge.s32.totalorder %s1145_s15, 2  ;;  %s917_s22 = sand.u32 1, %s1133_s12  }
 0x30c   : > { %s918_s20 = scalar_lea.sflag [#allocation4], %s917_s22 }
 0x30d   : > { %p1037_p5 = pnand %p1040_p4, %p1219_p6 }
 0x30f   : > { %p1038_p7 = pneg %p1037_p5 }
 0x311   : > { %1128 = dma.done.wait (%p1038_p7), %s918_s20, 256  }
 0x312   : > { %1130 = vsyncadd (%p1038_p7), %s918_s20, 4294967040  ;;  %p14_p8 = scmp.ge.s32.totalorder %s1202_s18, 4   ;;  %s1392_s12 = smov %s1137_s13 }
 0x313   : > { %s1393_s13 = smov %s1141_s14  ;;  %s1394_s14 = smov %s1213_s21 }
 0x314   : > { %s1395_s15 = smov %s1202_s18  ;;  %16 = sbr.rel (!%p14_p8) target bundleno = 3 (0x3), region = 89 }
 0x319   :  { %931 = vsyncpa [#allocation4], 1 }
 0x31a   :  { %933 = vsyncpa [#allocation4 + $0x1], 1 }

</bundles_post_ra>
